<compile_context>
chip_gen: v6e
topology: v6e:2x2x1
jax: 0.10.0
libtpu: 0.0.40
codegen_flags: <defaults>
</compile_context>

<pallas_src>
import jax
import jax.numpy as jnp
from jax.experimental import pallas as pl
from jax.experimental.pallas import tpu as pltpu


# ----------------------------- Pallas kernel ------------------------------- #
def _graph2graph_kernel(idx_ref, ef_ref, pn_ref, b1a_ref, w1b_ref, b1b_ref,
                        w2f_ref, b2f_ref, out_ref):
    idx = idx_ref[...]                                   # (TE, 2) int32: [src, dst]
    te = idx.shape[0]
    n_nodes = pn_ref.shape[0]

    # Gather-as-matmul: G[e, n] = (n == src[e]) + (n == dst[e]); handles src == dst.
    node_iota = jax.lax.broadcasted_iota(jnp.int32, (te, n_nodes), 1)
    g = ((node_iota == idx[:, 0:1]).astype(jnp.float32)
         + (node_iota == idx[:, 1:2]).astype(jnp.float32))

    # FCNN_one layer 1 on node[src]+node[dst]:
    #   G @ (nodes @ W1a) + b1a  ==  (node[src] + node[dst]) @ W1a + b1a
    h1 = jnp.dot(g, pn_ref[...], preferred_element_type=jnp.float32) + b1a_ref[...]
    h1 = jnp.maximum(h1, 0.0)

    # FCNN_two layer 1 on the original edge features.
    ef = ef_ref[...]                                     # (TE, c_in1)
    h2 = jnp.dot(ef, w1b_ref[...], preferred_element_type=jnp.float32) + b1b_ref[...]
    h2 = jnp.maximum(h2, 0.0)

    # Fused second layers: one lane-dense K = 2*c_out1 (=128) matmul.
    #   [h1 | h2] @ [W2a; W2b] + (b2a + b2b)  ==  h1 @ W2a + b2a + h2 @ W2b + b2b
    h = jnp.concatenate([h1, h2], axis=-1)               # (TE, 2*c_out1)
    z = jnp.dot(h, w2f_ref[...], preferred_element_type=jnp.float32) + b2f_ref[...]

    # InstanceNorm1d over the feature dim (biased variance, eps=1e-5, no affine), f32.
    mean = jnp.mean(z, axis=-1, keepdims=True)
    var = jnp.mean(jnp.square(z - mean), axis=-1, keepdims=True)
    zn = (z - mean) * jax.lax.rsqrt(var + 1e-5)

    # Dropout(p=0.1): identity (eval-mode determinism).
    # TODO(synk): training-mode dropout would need pltpu.prng_seed/prng_random_bits.
    # NOTE: c_out2 = 32 < 128 lanes -> stores are masked; kept as-is for fidelity
    # of the (E, C) layout (lane-dense repack would need a cross-tile reshape).
    out_ref[...] = ef + jnp.maximum(zn, 0.0)             # residual + ReLU


# ------------------------------ JAX wrapper -------------------------------- #
def _round_up(x, m):
    return (x + m - 1) // m * m


def init_params(key, c_in1, c_out1, c_out2):
    """Deterministic nn.Linear-style init: U(-1/sqrt(fan_in), 1/sqrt(fan_in))."""
    def linear(k, fan_in, fan_out):
        kw, kb = jax.random.split(k)
        bound = 1.0 / jnp.sqrt(fan_in)
        w = jax.random.uniform(kw, (fan_in, fan_out), jnp.float32, -bound, bound)
        b = jax.random.uniform(kb, (1, fan_out), jnp.float32, -bound, bound)
        return w, b

    k1, k2, k3, k4 = jax.random.split(key, 4)
    w1a, b1a = linear(k1, c_in1, c_out1)   # FCNN_one.fc1
    w2a, b2a = linear(k2, c_out1, c_out2)  # FCNN_one.fc2
    w1b, b1b = linear(k3, c_in1, c_out1)   # FCNN_two.fc1
    w2b, b2b = linear(k4, c_out1, c_out2)  # FCNN_two.fc2
    return (w1a, b1a, w2a, b2a, w1b, b1b, w2b, b2b)


@jax.jit
def graph2graph_forward(params, node_features, edge_index, edge_features):
    """node_features: (1, N, c_in1); edge_index: (1, R, E) int (row 0 = src ids,
    row 1 = dst ids); edge_features: (1, E, c_in1).
    Returns (node_features, new_edge_features)."""
    w1a, b1a, w2a, b2a, w1b, b1b, w2b, b2b = params
    c_in1 = edge_features.shape[-1]
    c_out1 = w1a.shape[-1]
    c_out2 = w2a.shape[-1]
    if c_out2 != c_in1:
        raise ValueError(f"residual add requires c_out2 == c_in1, got {c_out2} vs {c_in1}")

    # Faithful to the reference: the per-edge loop runs edge_index.shape[1] times.
    num_edges = edge_index.shape[1]
    src = edge_index[0, 0, :num_edges].astype(jnp.int32)
    dst = edge_index[0, 1, :num_edges].astype(jnp.int32)
    idx = jnp.stack([src, dst], axis=-1)                    # (E, 2) int32

    ef = edge_features[0, :num_edges, :]                    # (E, c_in1) originals

    # Fold FCNN_one.fc1 into the (tiny) node table once: (a+b)@W == a@W + b@W.
    proj_nodes = node_features[0] @ w1a                     # (N, c_out1)
    w2f = jnp.concatenate([w2a, w2b], axis=0)               # (2*c_out1, c_out2)
    b2f = b2a + b2b                                         # (1, c_out2)
    n_nodes = proj_nodes.shape[0]

    # Edge tiling: large tiles amortize the ~0.35us/step overhead; the cap keeps
    # the in-kernel (TE, N) gather matrix plus double-buffered tiles far below
    # v7x's 64 MiB VMEM at these feature widths.
    # TODO(synk): for very large node counts, replace the one-hot matmul gather
    # with a DMA / dynamic-gather path.
    te = min(2048, _round_up(num_edges, 8))
    e_pad = _round_up(num_edges, te)
    pad = e_pad - num_edges
    if pad:
        idx = jnp.pad(idx, ((0, pad), (0, 0)))
        ef_in = jnp.pad(ef, ((0, pad), (0, 0)))
    else:
        ef_in = ef

    new_ef = pl.pallas_call(
        _graph2graph_kernel,
        out_shape=jax.ShapeDtypeStruct((e_pad, c_out2), jnp.float32),
        grid_spec=pltpu.PrefetchScalarGridSpec(
            num_scalar_prefetch=0,
            grid=(e_pad // te,),
            in_specs=[
                pl.BlockSpec((te, 2), lambda i: (i, 0)),               # edge (src,dst) ids
                pl.BlockSpec((te, c_in1), lambda i: (i, 0)),           # edge-feature tile
                pl.BlockSpec((n_nodes, c_out1), lambda i: (0, 0)),     # nodes @ W1a (resident)
                pl.BlockSpec((1, c_out1), lambda i: (0, 0)),           # b1a (resident)
                pl.BlockSpec((c_in1, c_out1), lambda i: (0, 0)),       # W1b (resident)
                pl.BlockSpec((1, c_out1), lambda i: (0, 0)),           # b1b (resident)
                pl.BlockSpec((2 * c_out1, c_out2), lambda i: (0, 0)),  # [W2a; W2b] (resident)
                pl.BlockSpec((1, c_out2), lambda i: (0, 0)),           # b2a + b2b (resident)
            ],
            out_specs=pl.BlockSpec((te, c_out2), lambda i: (i, 0)),
        ),
        compiler_params=pltpu.CompilerParams(
            dimension_semantics=("parallel",),   # shard edge tiles across v7x's 2 TCs
        ),
    )(idx, ef_in, proj_nodes, b1a, w1b, b1b, w2f, b2f)

    new_ef = new_ef[:num_edges]
    if num_edges == edge_features.shape[1]:
        new_edge_features = new_ef[None]                    # full slab; no HBM scatter
    else:
        new_edge_features = edge_features.at[0, :num_edges, :].set(new_ef)
    return node_features, new_edge_features


# ----------------------------------- main ----------------------------------- #
if __name__ == "__main__":
    # Small shapes consistent with the module: c_out2 must equal c_in1 (residual add).
    N_NODES, N_EDGES = 8, 8
    C_IN1, C_OUT1, C_OUT2 = 32, 64, 32

    key = jax.random.PRNGKey(0)
    k_param, k_node, k_edge, k_src, k_dst = jax.random.split(key, 5)

    params = init_params(k_param, C_IN1, C_OUT1, C_OUT2)

    node_features = jax.random.normal(k_node, (1, N_NODES, C_IN1), jnp.float32)
    edge_features = jax.random.normal(k_edge, (1, N_EDGES, C_IN1), jnp.float32)

    # edge_index: (1, N_EDGES, N_EDGES) int32; row 0 = source node ids, row 1 = dest
    # node ids (remaining rows unused), so edge_index.shape[1] == number of edges,
    # matching the reference loop bound and indexing.
    src_ids = jax.random.randint(k_src, (N_EDGES,), 0, N_NODES, jnp.int32)
    dst_ids = jax.random.randint(k_dst, (N_EDGES,), 0, N_NODES, jnp.int32)
    edge_index = jnp.zeros((1, N_EDGES, N_EDGES), jnp.int32)
    edge_index = edge_index.at[0, 0, :].set(src_ids)
    edge_index = edge_index.at[0, 1, :].set(dst_ids)

    out_nodes, out_edges = graph2graph_forward(params, node_features, edge_index, edge_features)
    jax.block_until_ready((out_nodes, out_edges))

    assert out_nodes.shape == (1, N_NODES, C_IN1)
    assert out_edges.shape == (1, N_EDGES, C_IN1)
    assert bool(jnp.all(jnp.isfinite(out_edges)))
    print("KERNEL_OK")
</pallas_src>

<mosaic_0001>
module attributes {stable_mosaic.version = 11 : i64} {
  func.func @_graph2graph_kernel(%arg0: i32, %arg1: memref<8x2xi32, #tpu.memory_space<vmem>>, %arg2: memref<8x32xf32, #tpu.memory_space<vmem>>, %arg3: memref<8x64xf32, #tpu.memory_space<vmem>>, %arg4: memref<1x64xf32, #tpu.memory_space<vmem>>, %arg5: memref<32x64xf32, #tpu.memory_space<vmem>>, %arg6: memref<1x64xf32, #tpu.memory_space<vmem>>, %arg7: memref<128x32xf32, #tpu.memory_space<vmem>>, %arg8: memref<1x32xf32, #tpu.memory_space<vmem>>, %arg9: memref<8x32xf32, #tpu.memory_space<vmem>>) attributes {dimension_semantics = [#tpu.dimension_semantics<parallel>], iteration_bounds = array<i64: 1>, scalar_prefetch = 0 : i64, scratch_operands = 0 : i64, tpu.core_type = #tpu.core_type<tc>, window_params = [{transform_indices = @transform_0, window_bounds = array<i64: 8, 2>}, {transform_indices = @transform_1, window_bounds = array<i64: 8, 32>}, {pipeline_mode = #tpu.pipeline_mode<synchronous>, transform_indices = @transform_2, window_bounds = array<i64: 8, 64>}, {pipeline_mode = #tpu.pipeline_mode<synchronous>, transform_indices = @transform_3, window_bounds = array<i64: 1, 64>}, {pipeline_mode = #tpu.pipeline_mode<synchronous>, transform_indices = @transform_4, window_bounds = array<i64: 32, 64>}, {pipeline_mode = #tpu.pipeline_mode<synchronous>, transform_indices = @transform_5, window_bounds = array<i64: 1, 64>}, {pipeline_mode = #tpu.pipeline_mode<synchronous>, transform_indices = @transform_6, window_bounds = array<i64: 128, 32>}, {pipeline_mode = #tpu.pipeline_mode<synchronous>, transform_indices = @transform_7, window_bounds = array<i64: 1, 32>}, {transform_indices = @transform_8, window_bounds = array<i64: 8, 32>}]} {
    %c0 = arith.constant 0 : index
    %c0_0 = arith.constant 0 : index
    %0 = vector.load %arg1[%c0, %c0_0] : memref<8x2xi32, #tpu.memory_space<vmem>>, vector<8x2xi32>
    %1 = tpu.iota {dimensions = array<i32: 1>} : vector<8x8xi32>
    %2 = vector.extract_strided_slice %0 {offsets = [0, 0], sizes = [8, 1], strides = [1, 1]} : vector<8x2xi32> to vector<8x1xi32>
    %3 = vector.broadcast %2 : vector<8x1xi32> to vector<8x8xi32>
    %4 = arith.cmpi eq, %1, %3 : vector<8x8xi32>
    %5 = arith.extui %4 : vector<8x8xi1> to vector<8x8xi32>
    %6 = arith.sitofp %5 : vector<8x8xi32> to vector<8x8xf32>
    %7 = vector.extract_strided_slice %0 {offsets = [0, 1], sizes = [8, 1], strides = [1, 1]} : vector<8x2xi32> to vector<8x1xi32>
    %8 = vector.broadcast %7 : vector<8x1xi32> to vector<8x8xi32>
    %9 = arith.cmpi eq, %1, %8 : vector<8x8xi32>
    %10 = arith.extui %9 : vector<8x8xi1> to vector<8x8xi32>
    %11 = arith.sitofp %10 : vector<8x8xi32> to vector<8x8xf32>
    %12 = arith.addf %6, %11 : vector<8x8xf32>
    %c0_1 = arith.constant 0 : index
    %c0_2 = arith.constant 0 : index
    %13 = vector.load %arg3[%c0_1, %c0_2] : memref<8x64xf32, #tpu.memory_space<vmem>>, vector<8x64xf32>
    %cst = arith.constant dense<0.000000e+00> : vector<8x64xf32>
    %14 = tpu.matmul %12, %13, %cst {dimension_numbers = #tpu.dot_dimension_numbers<[1], [0], [0], [1], [0, 0, 1, 1], [], []>} : vector<8x8xf32>, vector<8x64xf32>, vector<8x64xf32> -> vector<8x64xf32>
    %c0_3 = arith.constant 0 : index
    %c0_4 = arith.constant 0 : index
    %15 = vector.load %arg4[%c0_3, %c0_4] : memref<1x64xf32, #tpu.memory_space<vmem>>, vector<1x64xf32>
    %16 = vector.broadcast %15 : vector<1x64xf32> to vector<8x64xf32>
    %17 = arith.addf %14, %16 : vector<8x64xf32>
    %cst_5 = arith.constant 0.000000e+00 : f32
    %18 = vector.broadcast %cst_5 : f32 to vector<8x64xf32>
    %19 = arith.maximumf %17, %18 : vector<8x64xf32>
    %c0_6 = arith.constant 0 : index
    %c0_7 = arith.constant 0 : index
    %20 = vector.load %arg2[%c0_6, %c0_7] : memref<8x32xf32, #tpu.memory_space<vmem>>, vector<8x32xf32>
    %c0_8 = arith.constant 0 : index
    %c0_9 = arith.constant 0 : index
    %21 = vector.load %arg5[%c0_8, %c0_9] : memref<32x64xf32, #tpu.memory_space<vmem>>, vector<32x64xf32>
    %cst_10 = arith.constant dense<0.000000e+00> : vector<8x64xf32>
    %22 = tpu.matmul %20, %21, %cst_10 {dimension_numbers = #tpu.dot_dimension_numbers<[1], [0], [0], [1], [0, 0, 1, 1], [], []>} : vector<8x32xf32>, vector<32x64xf32>, vector<8x64xf32> -> vector<8x64xf32>
    %c0_11 = arith.constant 0 : index
    %c0_12 = arith.constant 0 : index
    %23 = vector.load %arg6[%c0_11, %c0_12] : memref<1x64xf32, #tpu.memory_space<vmem>>, vector<1x64xf32>
    %24 = vector.broadcast %23 : vector<1x64xf32> to vector<8x64xf32>
    %25 = arith.addf %22, %24 : vector<8x64xf32>
    %cst_13 = arith.constant 0.000000e+00 : f32
    %26 = vector.broadcast %cst_13 : f32 to vector<8x64xf32>
    %27 = arith.maximumf %25, %26 : vector<8x64xf32>
    %28 = tpu.concatenate %19, %27 in 1 : vector<8x64xf32>, vector<8x64xf32> -> vector<8x128xf32>
    %c0_14 = arith.constant 0 : index
    %c0_15 = arith.constant 0 : index
    %29 = vector.load %arg7[%c0_14, %c0_15] : memref<128x32xf32, #tpu.memory_space<vmem>>, vector<128x32xf32>
    %cst_16 = arith.constant dense<0.000000e+00> : vector<8x32xf32>
    %30 = tpu.matmul %28, %29, %cst_16 {dimension_numbers = #tpu.dot_dimension_numbers<[1], [0], [0], [1], [0, 0, 1, 1], [], []>} : vector<8x128xf32>, vector<128x32xf32>, vector<8x32xf32> -> vector<8x32xf32>
    %c0_17 = arith.constant 0 : index
    %c0_18 = arith.constant 0 : index
    %31 = vector.load %arg8[%c0_17, %c0_18] : memref<1x32xf32, #tpu.memory_space<vmem>>, vector<1x32xf32>
    %32 = vector.broadcast %31 : vector<1x32xf32> to vector<8x32xf32>
    %33 = arith.addf %30, %32 : vector<8x32xf32>
    %cst_19 = arith.constant dense<0.000000e+00> : vector<8xf32>
    %34 = vector.multi_reduction <add>, %33, %cst_19 [1] : vector<8x32xf32> to vector<8xf32>
    %35 = vector.shape_cast %34 : vector<8xf32> to vector<8x1xf32>
    %cst_20 = arith.constant 3.200000e+01 : f32
    %36 = vector.broadcast %cst_20 : f32 to vector<8x1xf32>
    %37 = arith.divf %35, %36 : vector<8x1xf32>
    %38 = vector.broadcast %37 : vector<8x1xf32> to vector<8x32xf32>
    %39 = arith.subf %33, %38 : vector<8x32xf32>
    %40 = arith.mulf %39, %39 : vector<8x32xf32>
    %cst_21 = arith.constant dense<0.000000e+00> : vector<8xf32>
    %41 = vector.multi_reduction <add>, %40, %cst_21 [1] : vector<8x32xf32> to vector<8xf32>
    %42 = vector.shape_cast %41 : vector<8xf32> to vector<8x1xf32>
    %cst_22 = arith.constant 3.200000e+01 : f32
    %43 = vector.broadcast %cst_22 : f32 to vector<8x1xf32>
    %44 = arith.divf %42, %43 : vector<8x1xf32>
    %45 = vector.broadcast %37 : vector<8x1xf32> to vector<8x32xf32>
    %46 = arith.subf %33, %45 : vector<8x32xf32>
    %cst_23 = arith.constant 9.99999974E-6 : f32
    %47 = vector.broadcast %cst_23 : f32 to vector<8x1xf32>
    %48 = arith.addf %44, %47 : vector<8x1xf32>
    %49 = math.rsqrt %48 : vector<8x1xf32>
    %50 = vector.broadcast %49 : vector<8x1xf32> to vector<8x32xf32>
    %51 = arith.mulf %46, %50 : vector<8x32xf32>
    %cst_24 = arith.constant 0.000000e+00 : f32
    %52 = vector.broadcast %cst_24 : f32 to vector<8x32xf32>
    %53 = arith.maximumf %51, %52 : vector<8x32xf32>
    %54 = arith.addf %20, %53 : vector<8x32xf32>
    %c0_25 = arith.constant 0 : index
    %c0_26 = arith.constant 0 : index
    %55 = vector.load %arg9[%c0_25, %c0_26] : memref<8x32xf32, #tpu.memory_space<vmem>>, vector<8x32xf32>
    tpu.vector_store %arg9[%c0_25, %c0_26], %54 {strides = array<i32>} : memref<8x32xf32, #tpu.memory_space<vmem>>, vector<8x32xf32>,
    return
  }
  func.func @transform_0(%arg0: i32) -> (i32, i32) {
    %c0_i32 = arith.constant 0 : i32
    %c0_i32_0 = arith.constant 0 : i32
    return %arg0, %c0_i32 : i32, i32
  }
  func.func @transform_1(%arg0: i32) -> (i32, i32) {
    %c0_i32 = arith.constant 0 : i32
    %c0_i32_0 = arith.constant 0 : i32
    return %arg0, %c0_i32 : i32, i32
  }
  func.func @transform_2(%arg0: i32) -> (i32, i32) {
    %c0_i32 = arith.constant 0 : i32
    %c0_i32_0 = arith.constant 0 : i32
    %c0_i32_1 = arith.constant 0 : i32
    return %c0_i32, %c0_i32_0 : i32, i32
  }
  func.func @transform_3(%arg0: i32) -> (i32, i32) {
    %c0_i32 = arith.constant 0 : i32
    %c0_i32_0 = arith.constant 0 : i32
    %c0_i32_1 = arith.constant 0 : i32
    return %c0_i32, %c0_i32_0 : i32, i32
  }
  func.func @transform_4(%arg0: i32) -> (i32, i32) {
    %c0_i32 = arith.constant 0 : i32
    %c0_i32_0 = arith.constant 0 : i32
    %c0_i32_1 = arith.constant 0 : i32
    return %c0_i32, %c0_i32_0 : i32, i32
  }
  func.func @transform_5(%arg0: i32) -> (i32, i32) {
    %c0_i32 = arith.constant 0 : i32
    %c0_i32_0 = arith.constant 0 : i32
    %c0_i32_1 = arith.constant 0 : i32
    return %c0_i32, %c0_i32_0 : i32, i32
  }
  func.func @transform_6(%arg0: i32) -> (i32, i32) {
    %c0_i32 = arith.constant 0 : i32
    %c0_i32_0 = arith.constant 0 : i32
    %c0_i32_1 = arith.constant 0 : i32
    return %c0_i32, %c0_i32_0 : i32, i32
  }
  func.func @transform_7(%arg0: i32) -> (i32, i32) {
    %c0_i32 = arith.constant 0 : i32
    %c0_i32_0 = arith.constant 0 : i32
    %c0_i32_1 = arith.constant 0 : i32
    return %c0_i32, %c0_i32_0 : i32, i32
  }
  func.func @transform_8(%arg0: i32) -> (i32, i32) {
    %c0_i32 = arith.constant 0 : i32
    %c0_i32_0 = arith.constant 0 : i32
    return %arg0, %c0_i32 : i32, i32
  }
}

</mosaic_0001>

<bundles_post_ra>
// kernel: graph2graph_forward.1
= control target key start
LH: loop header
LB: loop body
LE: loop exit
PB: predicated region body
PF: predicated region fallthrough
CT: control target
= control target key end

     0   :  { %s629_s0 = inlined_call_operand.vmem [shape: s32[8,2], index: 0, kind: input, shape index: {}]   ;;  %s630_s1 = inlined_call_operand.vmem [shape: f32[8,32], index: 1, kind: input, shape index: {}]   ;;  %s631_s2 = inlined_call_operand.vmem [shape: f32[8,64], index: 2, kind: input, shape index: {}]   ;;  %s632_s3 = inlined_call_operand.vmem [shape: f32[1,64], index: 3, kind: input, shape index: {}]   ;;  %s633_s4 = inlined_call_operand.vmem [shape: f32[32,64], index: 4, kind: input, shape index: {}]   ;;  %s634_s5 = inlined_call_operand.vmem [shape: f32[1,64], index: 5, kind: input, shape index: {}]   ;;  %s635_s6 = inlined_call_operand.vmem [shape: f32[128,32], index: 6, kind: input, shape index: {}]   ;;  %s636_s7 = inlined_call_operand.vmem [shape: f32[1,32], index: 7, kind: input, shape index: {}]   ;;  %s637_s8 = inlined_call_operand.hbm [shape: f32[8,32], index: 8, kind: output, shape index: {}]  }
   0x1   :  { %v30_v0 = vld [vmem:[%s629_s0] sm:$0xff] }
   0x2   :  { %13 = vsyncpa [#allocation3], 0  ;;  %v460_v1 = vmov 0   ;;  %v461_v2 = vmov 0.0   ;;  %v46_v3 = vld [vmem:[%s631_s2] sm:$0xff]  ;;  %v462_v4 = vmov 1   ;;  %v31_v5 = vlaneseq }
   0x3   :  { %434 = vset.pattern.permute.xlu0 %v460_v1  ;;  %377 = vmatprep.subr.mxu1 %v461_v2  ;;  %vm463_vm0 = vmmov 0   ;;  %vm54_vm3 = vcmask 64512   ;;  %v133_v12 = vld [vmem:[%s633_s4 + $0x18] sm:$0xff]  ;;  %v132_v13 = vld [vmem:[%s633_s4 + $0x10] sm:$0xff]  ;;  %v131_v14 = vld [vmem:[%s633_s4 + $0x8] sm:$0xff]  ;;  %vm141_vm4 = vcmask 261120  }
   0x4   :  { %34 = vperm.xlu0 %434, %v30_v0   ;;  %393 = vmatprep.subr.mxu0 %v461_v2  ;;  %v32_v6 = vand.u32 127, %v31_v5  ;;  %v130_v15 = vld [vmem:[%s633_s4] sm:$0xff]  ;;  %v237_v17 = vld [vmem:[%s635_s6 + $0x78] sm:$0xff]  ;;  %v236_v18 = vld [vmem:[%s635_s6 + $0x70] sm:$0xff]  ;;  %s464_s23 = smov 64   ;;  %vm220_vm5 = vcmask 523264  }
   0x5   :  { %378 = vmatpush3.msra.mxu1 %v46_v3  ;;  %379 = vmatprep.mubr.msk.f32.mxu1 %vm463_vm0, %v461_v2  ;;  %v545_v16 = vld [vmem:[%s630_s1] sm:$0xff]  ;;  %v235_v19 = vld [vmem:[%s635_s6 + $0x68] sm:$0xff]  ;;  %v233_v21 = vld [vmem:[%s635_s6 + $0x58] sm:$0xff] }
   0x6   :  { %382 = vmatprep.subr.mxu1 %v461_v2  ;;  %425 = vmatprep.mubr.msk.f32.mxu0 %vm463_vm0, %v461_v2  ;;  %v234_v20 = vld [vmem:[%s635_s6 + $0x60] sm:$0xff]  ;;  %v232_v22 = vld [vmem:[%s635_s6 + $0x50] sm:$0xff]  ;;  %v231_v23 = vld [vmem:[%s635_s6 + $0x48] sm:$0xff] }
   0x7   :  { %394 = vmatpush3.msra.mxu0 %v237_v17  ;;  %v230_v24 = vld [vmem:[%s635_s6 + $0x40] sm:$0xff]  ;;  %v229_v25 = vld [vmem:[%s635_s6 + $0x38] sm:$0xff]  ;;  %v228_v26 = vld [vmem:[%s635_s6 + $0x30] sm:$0xff] }
   0x8   :  { %435 = vset.pattern.permute.xlu0 %v462_v4  ;;  %395 = vmatprep.subr.mxu0 %v461_v2  ;;  %v227_v27 = vld [vmem:[%s635_s6 + $0x28] sm:$0xff]  ;;  %v226_v28 = vld [vmem:[%s635_s6 + $0x20] sm:$0xff]  ;;  %v225_v29 = vld [vmem:[%s635_s6 + $0x18] sm:$0xff] }
   0x9   :  { %40 = vperm.xlu0 %435, %v30_v0   ;;  %396 = vmatpush3.msra.mxu0 %v236_v18  ;;  %v224_v30 = vld [vmem:[%s635_s6 + $0x10] sm:$0xff]  ;;  %v223_v31 = vld [vmem:[%s635_s6 + $0x8] sm:$0xff]  ;;  %v222_v32 = vld [vmem:[%s635_s6] sm:$0xff] }
   0xa   :  { %397 = vmatprep.subr.mxu0 %v461_v2  ;;  %v350_v35 = vld [vmem:[%s634_s5] ss:$0 sm:$0xff] }
   0xb   :  { %398 = vmatpush3.msra.mxu0 %v235_v19  ;;  %v348_v40 = vld [vmem:[%s632_s3] ss:$0 sm:$0xff]  ;;  %s465_s3 = smov [#allocation2]  }
   0xc   :  { %399 = vmatprep.subr.mxu0 %v461_v2  ;;  %v352_v45 = vld [vmem:[%s636_s7] ss:$0 sm:$0xff]  ;;  %s338_s5 = sshll.u32 %s465_s3, 4  ;;  %s339_s5 = int_to_ptr.vmem [resolvable:$true] %s338_s5 }
   0xd   :  { %400 = vmatpush3.msra.mxu0 %v234_v20  ;;  %s438_s7 = scalar_lea.vmem %s339_s5, 128  ;;  %p443_p1 = scmp.lt.s32.totalorder %s339_s5, %s339_s5 }
   0xe   :  { %401 = vmatprep.subr.mxu0 %v461_v2  ;;  %p439_p0 = scmp.ne.s32.totalorder %s339_s5, %s438_s7  ;;  %p444_p2 = scmp.lt.s32.totalorder %s438_s7, %s438_s7 }
   0xf   :  { %402 = vmatpush3.msra.mxu0 %v233_v21 }
  0x10   :  { %403 = vmatprep.subr.mxu0 %v461_v2  ;;  %p445_p3 = por %p444_p2, %p443_p1 }
  0x11   :  { %404 = vmatpush3.msra.mxu0 %v232_v22 }
  0x12   :  { %405 = vmatprep.subr.mxu0 %v461_v2  ;;  %p446_p4 = pnand %p445_p3, %p439_p0 }
  0x13   :  { %406 = vmatpush3.msra.mxu0 %v231_v23 }
  0x14   :  { %407 = vmatprep.subr.mxu0 %v461_v2 }
  0x15   :  { %408 = vmatpush3.msra.mxu0 %v230_v24 }
  0x16   :  { %409 = vmatprep.subr.mxu0 %v461_v2 }
  0x17   :  { %410 = vmatpush3.msra.mxu0 %v229_v25 }
  0x18   :  { %411 = vmatprep.subr.mxu0 %v461_v2 }
  0x19   :  { %412 = vmatpush3.msra.mxu0 %v228_v26 }
  0x1a   :  { %413 = vmatprep.subr.mxu0 %v461_v2 }
  0x1b   :  { %414 = vmatpush3.msra.mxu0 %v227_v27 }
  0x1c   :  { %415 = vmatprep.subr.mxu0 %v461_v2 }
  0x1d   :  { %416 = vmatpush3.msra.mxu0 %v226_v28 }
  0x1e   :  { %417 = vmatprep.subr.mxu0 %v461_v2 }
  0x1f   :  { %418 = vmatpush3.msra.mxu0 %v225_v29 }
  0x20   :  { %419 = vmatprep.subr.mxu0 %v461_v2 }
  0x21   :  { %420 = vmatpush3.msra.mxu0 %v224_v30 }
  0x22   :  { %421 = vmatprep.subr.mxu0 %v461_v2 }
  0x23   :  { %422 = vmatpush3.msra.mxu0 %v223_v31 }
  0x24   :  { %423 = vmatprep.subr.mxu0 %v461_v2 }
  0x25   :  { %424 = vmatpush3.msra.mxu0 %v222_v32 }
  0x7f   :  { %v35_v7 = vpop.permute.xlu0 %34 }
  0x80   :  { %vm36_vm1 = vcmp.eq.s32.totalorder %v32_v6, %v35_v7 }
  0x81   :  { %v346_v9 = vsel %vm36_vm1, 1.0, %v461_v2 }
  0x84   :  { %v41_v8 = vpop.permute.xlu0 %40 }
  0x85   :  { %vm42_vm2 = vcmp.eq.s32.totalorder %v32_v6, %v41_v8 }
  0x86   :  { %v347_v10 = vsel %vm42_vm2, 1.0, %v461_v2 }
  0x87   :  { %v45_v11 = vadd.f32 %v347_v10, %v346_v9 }
  0x89   :  { %380 = vmatmul.mubr.msk.f32.vlgmr.msra.gmra.mxu1 %vm54_vm3, %v45_v11 }
  0x8a   :  { %383 = vmatpush3.msra.mxu1 %v133_v12  ;;  %390 = vmatprep.mubr.msk.f32.mxu1 %vm463_vm0, %v461_v2 }
  0x8b   :  { %384 = vmatprep.subr.mxu1 %v461_v2 }
  0x8c   :  { %385 = vmatpush3.msra.mxu1 %v132_v13 }
  0x8d   :  { %386 = vmatprep.subr.mxu1 %v461_v2 }
  0x8e   :  { %387 = vmatpush3.msra.mxu1 %v131_v14 }
  0x8f   :  { %388 = vmatprep.subr.mxu1 %v461_v2 }
  0x90   :  { %389 = vmatpush3.msra.mxu1 %v130_v15 }
  0x91   :  { %391 = vmatmul.mubr.msk.f32.vlgmr.msra.gmra.mxu1 %vm141_vm4, %v545_v16 }
 0x149   :  { %v124_v33 = vpop.f32.mrf.mxu1 }
 0x14a   :  { %v125_v41 = vadd.f32 %v348_v40, %v124_v33 }
 0x14b   :  { %v381_v34 = vpop.f32.mrf.mxu1 }
 0x14c   :  { %v128_v42 = vmax.f32 %v125_v41, 0.0 }
 0x151   :  { %v211_v36 = vpop.f32.mrf.mxu1 }
 0x152   :  { %v212_v37 = vadd.f32 %v350_v35, %v211_v36 }
 0x153   :  { %v392_v38 = vpop.f32.mrf.mxu1 }
 0x154   :  { %v215_v39 = vmax.f32 %v212_v37, 0.0 }
 0x156   :  { %217 = vrot.lane.b32.xlu1 %v215_v39, %s464_s23 }
 0x1c8   :  { %v218_v43 = vpop.permute.xlu1 %217 }
 0x1c9   :  { %v221_v44 = vsel %vm220_vm5, %v128_v42, %v218_v43 }
 0x1ca   :  { %426 = vmatmul.mubr.f32.vlgmr.msra.gmra.mxu0 %v221_v44 }
 0x28a   :  { %v311_v46 = vpop.f32.mrf.mxu0 }
 0x28b   :  { %v312_v47 = vadd.f32 %v352_v45, %v311_v46 }
 0x28c   :  { %v427_v48 = vpop.f32.mrf.mxu0 }
 0x28d   :  { %v315_v49 = vsel %vm141_vm4, %v312_v47, 0.0 }
 0x28e   :  { %316 = vadd.xlane.f32.xlu1 %v315_v49 }
 0x317   :  { %v317_v50 = vpop.xlane.xlu1 %316 }
 0x318   :  { %v319_v51 = vmul.f32 0.03125, %v317_v50 }
 0x31a   :  { %v320_v52 = vsub.f32 %v312_v47, %v319_v51 }
 0x31c   :  { %v321_v53 = vmul.f32 %v320_v52, %v320_v52 }
 0x31e   :  { %v322_v54 = vsel %vm141_vm4, %v321_v53, 0.0 }
 0x31f   :  { %323 = vadd.xlane.f32.xlu0 %v322_v54 }
 0x3a8   :  { %v324_v55 = vpop.xlane.xlu0 %323 }
 0x3a9   :  { %v325_v56 = vmul.f32 0.03125, %v324_v55 }
 0x3ab   :  { %v326_v57 = vadd.f32 1e-05, %v325_v56 }
 0x3ad   :  { %436 = vrsqrt.f32 %v326_v57 }
 0x3ba   :  { %v437_v58 = vpop.eup %436 }
 0x3bb   :  { %v328_v59 = vmul.f32 %v437_v58, %v320_v52 }
 0x3bd   :  { %v329_v60 = vmax.f32 %v328_v59, 0.0 }
 0x3bf   :  { %v330_v61 = vadd.f32 %v329_v60, %v545_v16 }
 0x3c1   :  { %331 = vst.msk [vmem:[#allocation2] sm:$0xff] %vm141_vm4, %v330_v61 }
 0x3c2   :  { %449 = shalt.err (!%p446_p4)
}
 0x3c3   :  { %341 = dma.vmem_to_hbm [thread:$0]  %s339_s5, 128, %s637_s8, [#allocation3]  }
 0x3c4   :  { %458 = dma.done.wait [#allocation3], 128  }
 0x3c5   :  { %459 = vsyncadd [#allocation3], 4294967168 }
 0x3c6   :  { %345 = vsyncpa [#allocation3], 1 }

</bundles_post_ra>
